<compile_context>
chip_gen: v6e
topology: v6e:2x2x1
jax: 0.10.0
libtpu: 0.0.40
codegen_flags: <defaults>
</compile_context>

<pallas_src>
import functools

import jax
import jax.numpy as jnp
from jax.experimental import pallas as pl
from jax.experimental.pallas import tpu as pltpu


def discrnet_kernel(x_ref, w1_ref, b1_ref, w2_ref, b2_ref, o_ref):
    # x_ref:  (state_size, TB)     -- batch tile on lanes
    # w1_ref: (hidden, state_size) -- resident in VMEM (constant index_map)
    # b1_ref: (hidden, 1)
    # w2_ref: (action, hidden)
    # b2_ref: (action, 1)
    # o_ref:  (action, TB)
    x = x_ref[...]
    h = jnp.dot(w1_ref[...], x, preferred_element_type=jnp.float32) + b1_ref[...]
    h = jnp.tanh(h)  # (hidden, TB): full 128-lane VPU/EUP utilization
    out = jnp.dot(w2_ref[...], h.astype(w2_ref.dtype),
                  preferred_element_type=jnp.float32) + b2_ref[...]
    o_ref[...] = out.astype(o_ref.dtype)


def discrnet_forward(x, w1, b1, w2, b2, *, block_batch=2048):
    """x: (batch, state_size). Params in PyTorch nn.Linear layout:
       w1: (hidden, state_size), b1: (hidden, 1),
       w2: (action, hidden),     b2: (action, 1).
       Returns (batch, action) float32 logits."""
    batch, state_size = x.shape
    hidden = w1.shape[0]
    action = w2.shape[0]

    # Batch tile on lanes: multiple of 128, large enough to amortize the
    # ~0.35us/step grid overhead, tiny vs scoped VMEM (11*TB*4 bytes/buffer),
    # so it is safe on v7x's 64 MiB VMEM as well.
    tb = min(block_batch, pl.cdiv(batch, 128) * 128)
    padded = pl.cdiv(batch, tb) * tb
    grid = (padded // tb,)

    # Layout plumbing (not compute hoisting): transpose so batch is the lane
    # axis and pad the tail tile with zeros.
    x_t = jnp.pad(x.T, ((0, 0), (0, padded - batch)))  # (state_size, padded)

    cost = pl.CostEstimate(
        flops=2 * batch * (state_size * hidden + hidden * action),
        transcendentals=batch * hidden,
        bytes_accessed=(x.size * x.dtype.itemsize
                        + batch * action * 4
                        + w1.size * 4 + b1.size * 4 + w2.size * 4 + b2.size * 4),
    )

    out_t = pl.pallas_call(
        discrnet_kernel,
        out_shape=jax.ShapeDtypeStruct((action, padded), jnp.float32),
        grid_spec=pltpu.PrefetchScalarGridSpec(
            num_scalar_prefetch=0,
            grid=grid,
            in_specs=[
                # x tile: (state_size, TB), strides along batch with the grid.
                pl.BlockSpec((state_size, tb), lambda i: (0, i)),
                # Params: constant block index -> DMA'd once, VMEM-resident.
                pl.BlockSpec((hidden, state_size), lambda i: (0, 0)),
                pl.BlockSpec((hidden, 1), lambda i: (0, 0)),
                pl.BlockSpec((action, hidden), lambda i: (0, 0)),
                pl.BlockSpec((action, 1), lambda i: (0, 0)),
            ],
            out_specs=pl.BlockSpec((action, tb), lambda i: (0, i)),
        ),
        compiler_params=pltpu.CompilerParams(
            dimension_semantics=("parallel",),
        ),
        cost_estimate=cost,
    )(x_t, w1, b1, w2, b2)

    # Back to the PyTorch-facing (batch, action) layout, dropping padding.
    return out_t[:, :batch].T


def init_params(key, state_size=11, hidden_size=32, action_size=2):
    # PyTorch nn.Linear default init: uniform(-1/sqrt(fan_in), 1/sqrt(fan_in))
    # for both weight and bias; stored in the (out_features, in_features)
    # layout that nn.Linear uses natively.
    k1, k2, k3, k4 = jax.random.split(key, 4)
    bound1 = 1.0 / jnp.sqrt(jnp.float32(state_size))
    bound2 = 1.0 / jnp.sqrt(jnp.float32(hidden_size))
    w1 = jax.random.uniform(k1, (hidden_size, state_size), jnp.float32, -bound1, bound1)
    b1 = jax.random.uniform(k2, (hidden_size, 1), jnp.float32, -bound1, bound1)
    w2 = jax.random.uniform(k3, (action_size, hidden_size), jnp.float32, -bound2, bound2)
    b2 = jax.random.uniform(k4, (action_size, 1), jnp.float32, -bound2, bound2)
    return w1, b1, w2, b2


if __name__ == "__main__":
    key = jax.random.PRNGKey(0)
    k_x, k_p = jax.random.split(key)

    batch = 4
    state_size = 11
    hidden_size = 32
    action_size = 2

    x = jax.random.normal(k_x, (batch, state_size), dtype=jnp.float32)
    w1, b1, w2, b2 = init_params(k_p, state_size, hidden_size, action_size)

    out = discrnet_forward(x, w1, b1, w2, b2)
    out = jax.block_until_ready(out)

    # Reference check in plain JAX (same math as torch: tanh(fc1(x)) -> fc2).
    ref = jnp.tanh(x @ w1.T + b1.T) @ w2.T + b2.T
    assert out.shape == (batch, action_size)
    assert jnp.allclose(out, ref, atol=1e-5, rtol=1e-5)

    # Also exercise the multi-tile (non-divisible batch) path.
    big_batch = 3000
    xb = jax.random.normal(k_x, (big_batch, state_size), dtype=jnp.float32)
    out_b = jax.block_until_ready(discrnet_forward(xb, w1, b1, w2, b2))
    ref_b = jnp.tanh(xb @ w1.T + b1.T) @ w2.T + b2.T
    assert out_b.shape == (big_batch, action_size)
    assert jnp.allclose(out_b, ref_b, atol=1e-4, rtol=1e-4)

    print("KERNEL_OK")
</pallas_src>

<mosaic_0001>
module attributes {stable_mosaic.version = 11 : i64} {
  func.func @discrnet_kernel(%arg0: i32, %arg1: memref<11x128xf32, #tpu.memory_space<vmem>>, %arg2: memref<32x11xf32, #tpu.memory_space<vmem>>, %arg3: memref<32x1xf32, #tpu.memory_space<vmem>>, %arg4: memref<2x32xf32, #tpu.memory_space<vmem>>, %arg5: memref<2x1xf32, #tpu.memory_space<vmem>>, %arg6: memref<2x128xf32, #tpu.memory_space<vmem>>) attributes {dimension_semantics = [#tpu.dimension_semantics<parallel>], iteration_bounds = array<i64: 1>, scalar_prefetch = 0 : i64, scratch_operands = 0 : i64, tpu.core_type = #tpu.core_type<tc>, window_params = [{transform_indices = @transform_0, window_bounds = array<i64: 11, 128>}, {pipeline_mode = #tpu.pipeline_mode<synchronous>, transform_indices = @transform_1, window_bounds = array<i64: 32, 11>}, {pipeline_mode = #tpu.pipeline_mode<synchronous>, transform_indices = @transform_2, window_bounds = array<i64: 32, 1>}, {pipeline_mode = #tpu.pipeline_mode<synchronous>, transform_indices = @transform_3, window_bounds = array<i64: 2, 32>}, {pipeline_mode = #tpu.pipeline_mode<synchronous>, transform_indices = @transform_4, window_bounds = array<i64: 2, 1>}, {transform_indices = @transform_5, window_bounds = array<i64: 2, 128>}]} {
    %c0 = arith.constant 0 : index
    %c0_0 = arith.constant 0 : index
    %0 = vector.load %arg1[%c0, %c0_0] : memref<11x128xf32, #tpu.memory_space<vmem>>, vector<11x128xf32>
    %c0_1 = arith.constant 0 : index
    %c0_2 = arith.constant 0 : index
    %1 = vector.load %arg2[%c0_1, %c0_2] : memref<32x11xf32, #tpu.memory_space<vmem>>, vector<32x11xf32>
    %cst = arith.constant dense<0.000000e+00> : vector<32x128xf32>
    %2 = tpu.matmul %1, %0, %cst {dimension_numbers = #tpu.dot_dimension_numbers<[1], [0], [0], [1], [0, 0, 1, 1], [], []>} : vector<32x11xf32>, vector<11x128xf32>, vector<32x128xf32> -> vector<32x128xf32>
    %c0_3 = arith.constant 0 : index
    %c0_4 = arith.constant 0 : index
    %3 = vector.load %arg3[%c0_3, %c0_4] : memref<32x1xf32, #tpu.memory_space<vmem>>, vector<32x1xf32>
    %4 = vector.broadcast %3 : vector<32x1xf32> to vector<32x128xf32>
    %5 = arith.addf %2, %4 : vector<32x128xf32>
    %6 = math.tanh %5 : vector<32x128xf32>
    %c0_5 = arith.constant 0 : index
    %c0_6 = arith.constant 0 : index
    %7 = vector.load %arg4[%c0_5, %c0_6] : memref<2x32xf32, #tpu.memory_space<vmem>>, vector<2x32xf32>
    %cst_7 = arith.constant dense<0.000000e+00> : vector<2x128xf32>
    %8 = tpu.matmul %7, %6, %cst_7 {dimension_numbers = #tpu.dot_dimension_numbers<[1], [0], [0], [1], [0, 0, 1, 1], [], []>} : vector<2x32xf32>, vector<32x128xf32>, vector<2x128xf32> -> vector<2x128xf32>
    %c0_8 = arith.constant 0 : index
    %c0_9 = arith.constant 0 : index
    %9 = vector.load %arg5[%c0_8, %c0_9] : memref<2x1xf32, #tpu.memory_space<vmem>>, vector<2x1xf32>
    %10 = vector.broadcast %9 : vector<2x1xf32> to vector<2x128xf32>
    %11 = arith.addf %8, %10 : vector<2x128xf32>
    %c0_10 = arith.constant 0 : index
    %c0_11 = arith.constant 0 : index
    %12 = vector.load %arg6[%c0_10, %c0_11] : memref<2x128xf32, #tpu.memory_space<vmem>>, vector<2x128xf32>
    tpu.vector_store %arg6[%c0_10, %c0_11], %11 {strides = array<i32>} : memref<2x128xf32, #tpu.memory_space<vmem>>, vector<2x128xf32>,
    return
  }
  func.func @transform_0(%arg0: i32) -> (i32, i32) {
    %c0_i32 = arith.constant 0 : i32
    %c0_i32_0 = arith.constant 0 : i32
    return %c0_i32, %arg0 : i32, i32
  }
  func.func @transform_1(%arg0: i32) -> (i32, i32) {
    %c0_i32 = arith.constant 0 : i32
    %c0_i32_0 = arith.constant 0 : i32
    %c0_i32_1 = arith.constant 0 : i32
    return %c0_i32, %c0_i32_0 : i32, i32
  }
  func.func @transform_2(%arg0: i32) -> (i32, i32) {
    %c0_i32 = arith.constant 0 : i32
    %c0_i32_0 = arith.constant 0 : i32
    %c0_i32_1 = arith.constant 0 : i32
    return %c0_i32, %c0_i32_0 : i32, i32
  }
  func.func @transform_3(%arg0: i32) -> (i32, i32) {
    %c0_i32 = arith.constant 0 : i32
    %c0_i32_0 = arith.constant 0 : i32
    %c0_i32_1 = arith.constant 0 : i32
    return %c0_i32, %c0_i32_0 : i32, i32
  }
  func.func @transform_4(%arg0: i32) -> (i32, i32) {
    %c0_i32 = arith.constant 0 : i32
    %c0_i32_0 = arith.constant 0 : i32
    %c0_i32_1 = arith.constant 0 : i32
    return %c0_i32, %c0_i32_0 : i32, i32
  }
  func.func @transform_5(%arg0: i32) -> (i32, i32) {
    %c0_i32 = arith.constant 0 : i32
    %c0_i32_0 = arith.constant 0 : i32
    return %c0_i32, %arg0 : i32, i32
  }
}

</mosaic_0001>

<bundles_post_ra>
// kernel: tpu_custom_call.1
= control target key start
LH: loop header
LB: loop body
LE: loop exit
PB: predicated region body
PF: predicated region fallthrough
CT: control target
= control target key end

     0   :  { %vm64_vm0 = vcmask 1042432   ;;  %vm51_vm1 = vcmask 89088   ;;  %v327_v4 = vmov 0   ;;  %s404_s0 = inlined_call_operand.vmem [shape: f32[11,128], index: 0, kind: input, shape index: {}]   ;;  %s405_s1 = inlined_call_operand.vmem [shape: f32[32,11], index: 1, kind: input, shape index: {}]   ;;  %s406_s2 = inlined_call_operand.vmem [shape: f32[32,1], index: 2, kind: input, shape index: {}]   ;;  %s407_s3 = inlined_call_operand.vmem [shape: f32[2,32], index: 3, kind: input, shape index: {}]   ;;  %s408_s4 = inlined_call_operand.vmem [shape: f32[2,1], index: 4, kind: input, shape index: {}]   ;;  %s409_s5 = inlined_call_operand.hbm [shape: f32[2,128], index: 5, kind: output, shape index: {}]  }
   0x1   :  { %v22_v0 = vld [vmem:[%s404_s0 + $0x8] sm:$0x7]  ;;  %v21_v1 = vld [vmem:[%s404_s0] sm:$0xff]  ;;  %295 = vset.pattern.permute.xlu0 %v327_v4  ;;  %v30_v5 = vld [vmem:[%s406_s2 + $0x18] sm:$0xff] }
   0x2   :  { %v23_v2 = vld [vmem:[%s405_s1] sm:$0xff]  ;;  %270 = vmatprep.subr.msk.mxu0 %vm64_vm0, %v22_v0  ;;  %v24_v3 = vld [vmem:[%s405_s1 + $0x8] sm:$0xff]  ;;  %v25_v7 = vld [vmem:[%s405_s1 + $0x10] sm:$0xff]  ;;  %48 = vperm.xlu0 %295, %v30_v5  }
   0x3   :  { %274 = vmatprep.mubr.msk.f32.mxu0 %vm51_vm1, %v23_v2  ;;  %271 = vmatpush3.msk.msra.mxu0 %vm64_vm0, %v22_v0  ;;  %v28_v6 = vld [vmem:[%s406_s2 + $0x8] sm:$0xff] }
   0x4   :  { %272 = vmatprep.subr.mxu0 %v21_v1 }
   0x5   :  { %10 = vsyncpa [#allocation3], 0  ;;  %273 = vmatpush3.msra.mxu0 %v21_v1  ;;  %296 = vset.pattern.permute.xlu1 %v327_v4  ;;  %v29_v8 = vld [vmem:[%s406_s2 + $0x10] sm:$0xff]  ;;  %v26_v9 = vld [vmem:[%s405_s1 + $0x18] sm:$0xff]  ;;  %v328_v12 = vmov 0.0   ;;  %vm329_vm2 = vmmov 0  }
   0x6   :  { %275 = vmatmul.mubr.msk.f32.vlgmr.msra.gmra.mxu0 %vm51_vm1, %v24_v3  ;;  %38 = vperm.xlu1 %296, %v28_v6   ;;  %v27_v10 = vld [vmem:[%s406_s2] sm:$0xff]  ;;  %vm164_vm3 = vcmask 261120  }
   0x7   :  { %277 = vmatprep.mubr.msk.f32.mxu0 %vm51_vm1, %v25_v7  ;;  %43 = vperm.xlu0 %295, %v29_v8   ;;  %v158_v11 = vld [vmem:[%s408_s4] sm:$0x3]  ;;  %s330_s4 = smov [#allocation2]  }
   0x8   :  { %280 = vmatprep.subr.mxu1 %v328_v12  ;;  %288 = vmatprep.mubr.msk.f32.mxu1 %vm329_vm2, %v328_v12  ;;  %v157_v28 = vld [vmem:[%s407_s3] sm:$0x3]  ;;  %s245_s14 = sshll.u32 %s330_s4, 4  ;;  %s246_s14 = int_to_ptr.vmem [resolvable:$true] %s245_s14 }
   0x9   :  { %s305_s15 = scalar_lea.vmem %s246_s14, 32  ;;  %p310_p1 = scmp.lt.s32.totalorder %s246_s14, %s246_s14 }
   0xa   :  { %278 = vmatmul.mubr.msk.f32.gmra.mxu0 %vm51_vm1, %v26_v9  ;;  %33 = vperm.xlu1 %296, %v27_v10   ;;  %p306_p0 = scmp.ne.s32.totalorder %s246_s14, %s305_s15  ;;  %p311_p2 = scmp.lt.s32.totalorder %s305_s15, %s305_s15 }
   0xb   :  { %161 = vperm.xlu0 %295, %v158_v11  }
   0xc   :  { %p312_p3 = por %p311_p2, %p310_p1 }
   0xe   :  { %p313_p4 = pnand %p312_p3, %p306_p0 }
  0x7d   :  { %v49_v13 = vpop.permute.xlu0 %48 }
  0x81   :  { %v39_v14 = vpop.permute.xlu1 %38 }
  0x82   :  { %v44_v18 = vpop.permute.xlu0 %43 }
  0x85   :  { %v34_v20 = vpop.permute.xlu1 %33 }
  0x86   :  { %v162_v30 = vpop.permute.xlu0 %161 }
  0xc6   :  { %v276_v15 = vpop.f32.mrf.mxu0 }
  0xc7   :  { %v140_v22 = vadd.f32 %v276_v15, %v39_v14 }
  0xc8   :  { %v134_v16 = vpop.f32.mrf.mxu0 }
  0xc9   :  { %v135_v24 = vadd.f32 %v134_v16, %v34_v20 }
  0xca   :  { %v279_v17 = vpop.f32.mrf.mxu0 }
  0xcb   :  { %v150_v19 = vadd.f32 %v279_v17, %v49_v13 }
  0xcc   :  { %v144_v21 = vpop.f32.mrf.mxu0 }
  0xcd   :  { %297 = vtanh.f32 %v150_v19  ;;  %v145_v23 = vadd.f32 %v144_v21, %v44_v18 }
  0xcf   :  { %299 = vtanh.f32 %v145_v23 }
  0xd0   :  { %301 = vtanh.f32 %v140_v22 }
  0xd1   :  { %303 = vtanh.f32 %v135_v24 }
  0xda   :  { %v298_v25 = vpop.eup %297 }
  0xdb   :  { %281 = vmatpush3.msra.mxu1 %v298_v25 }
  0xdc   :  { %v300_v26 = vpop.eup %299  ;;  %282 = vmatprep.subr.mxu1 %v328_v12 }
  0xdd   :  { %283 = vmatpush3.msra.mxu1 %v300_v26  ;;  %v302_v27 = vpop.eup %301 }
  0xde   :  { %284 = vmatprep.subr.mxu1 %v328_v12  ;;  %v304_v29 = vpop.eup %303 }
  0xdf   :  { %285 = vmatpush3.msra.mxu1 %v302_v27 }
  0xe0   :  { %286 = vmatprep.subr.mxu1 %v328_v12 }
  0xe1   :  { %287 = vmatpush3.msra.mxu1 %v304_v29 }
  0xe2   :  { %289 = vmatmul.mubr.msk.f32.vlgmr.msra.gmra.mxu1 %vm164_vm3, %v157_v28 }
 0x1a2   :  { %v234_v31 = vpop.f32.mrf.mxu1 }
 0x1a3   :  { %v235_v32 = vadd.f32 %v234_v31, %v162_v30 }
 0x1a4   :  { %v290_v33 = vpop.f32.mrf.mxu1 }
 0x1a5   :  { %238 = vst [vmem:[#allocation2] sm:$0x3] %v235_v32 }
 0x1a6   :  { %316 = shalt.err (!%p313_p4)
}
 0x1a7   :  { %248 = dma.vmem_to_hbm [thread:$0]  %s246_s14, 32, %s409_s5, [#allocation3]  }
 0x1a8   :  { %325 = dma.done.wait [#allocation3], 32  }
 0x1a9   :  { %326 = vsyncadd [#allocation3], 4294967264 }
 0x1aa   :  { %252 = vsyncpa [#allocation3], 1 }

</bundles_post_ra>
